<compile_context>
chip_gen: v7x
topology: tpu7x:2x2x1
jax: 0.10.0
libtpu: 0.0.40
codegen_flags: <defaults>
</compile_context>

<pallas_src>
import functools

import jax
import jax.numpy as jnp
from jax import lax
from jax.experimental import pallas as pl
from jax.experimental.pallas import tpu as pltpu


IN_F = 2                 # input features
HID_F = 20               # hidden units
HALF = HID_F // 2        # hidden units evaluated per lane parity (10)
OUT_F = 2                # output features
LANES = 128
LANES2 = 2 * LANES       # 256 interleaved values (= 128 samples) per row
CH = 8                   # sublane rows per register-resident chunk (1024 samples)
N_WROWS = 5 * HALF + 1   # 51 per-lane weight slabs (5 per half-step + output bias)


def _mlp_kernel(x_ref, w_ref, o_ref):
    """Fused Linear(2,20)->ReLU->Linear(20,2) on interleaved (x0,x1) lanes.

    x_ref: (TM, 256) f32, natural layout: lane 2k -> x0 of sample k, 2k+1 -> x1.
    w_ref: (51, 8, 256) f32 per-lane weight slabs (see _pack_weights).
    o_ref: (TM, 256) f32, same layout: lane 2k -> y0 of sample k, 2k+1 -> y1.
    """
    tm = x_ref.shape[0]
    n_chunks = tm // CH          # TM is always a multiple of CH (wrapper invariant)

    # Hoisted loop invariants: lane-parity mask and the output-bias slab.
    lane = lax.broadcasted_iota(jnp.int32, (CH, LANES2), 1)
    even = (lane & 1) == 0
    ybias = w_ref[N_WROWS - 1]   # b2[0] on even lanes, b2[1] on odd lanes

    def chunk_body(c, carry):
        row = pl.multiple_of(c * CH, CH)
        a = x_ref[pl.ds(row, CH), :]                        # (8, 256) interleaved

        # Partner exchange (XLU rolls + parity selects): every lane now holds
        # both features of its own sample.
        xx0 = jnp.where(even, a, pltpu.roll(a, 1, axis=1))
        xx1 = jnp.where(even, pltpu.roll(a, LANES2 - 1, axis=1), a)

        accp = jnp.zeros((CH, LANES2), jnp.float32)   # own-parity output partial
        accq = jnp.zeros((CH, LANES2), jnp.float32)   # cross-parity output partial

        # Half-split hidden chain: step i evaluates hidden unit i on even lanes
        # and unit HALF+i on odd lanes (weights pre-selected per lane).
        for i in range(HALF):
            b = 5 * i
            h = w_ref[b] * xx0 + w_ref[b + 1] * xx1 + w_ref[b + 2]
            r = jnp.maximum(h, 0.0)
            accp = accp + w_ref[b + 3] * r
            accq = accq + w_ref[b + 4] * r

        # Swap the cross-parity partials between the two lanes of each sample
        # and add the output bias -> result is already in interleaved order.
        accx = jnp.where(even,
                         pltpu.roll(accq, LANES2 - 1, axis=1),
                         pltpu.roll(accq, 1, axis=1))
        o_ref[pl.ds(row, CH), :] = accp + accx + ybias
        return carry

    lax.fori_loop(0, n_chunks, chunk_body, 0)


def _pack_weights(w1, b1, w2, b2):
    """Expand the 44 scalars into 51 per-lane (CH, 256) weight slabs.

    Row layout (row = 5*i + c for half-step i in [0, 10)):
      c=0: coeff of x0    c=1: coeff of x1    c=2: hidden bias
      c=3: own-parity second-layer weight (even lanes -> y0 col, odd -> y1 col)
      c=4: cross-parity second-layer weight
    Row 50: output bias (b2[0] on even lanes, b2[1] on odd lanes).
    """
    parity = jnp.arange(LANES2, dtype=jnp.int32) % 2
    ev = (parity == 0)[None, :]                            # (1, 256)
    step = jnp.arange(HALF, dtype=jnp.int32)[:, None]      # (10, 1)
    j = jnp.where(ev, step, step + HALF)                   # (10, 256) hidden unit per lane
    c0 = w1[0, j]                                          # coeff of x0
    c1 = w1[1, j]                                          # coeff of x1
    cb = b1[j]                                             # hidden bias
    cp = jnp.where(ev, w2[j, 0], w2[j, 1])                 # own-parity L2 weight
    cq = jnp.where(ev, w2[j, 1], w2[j, 0])                 # cross-parity L2 weight
    yb = jnp.where(ev, b2[0], b2[1])                       # (1, 256) output bias
    per_step = jnp.stack([c0, c1, cb, cp, cq], axis=1)     # (10, 5, 256)
    rows = jnp.concatenate([per_step.reshape(5 * HALF, LANES2), yb], axis=0)
    rows = rows.astype(jnp.float32)
    # Pre-broadcast along the chunk sublane axis so in-kernel multiplies are
    # full-width vreg ops with no broadcast_in_dim inside the chunk loop.
    return jnp.broadcast_to(rows[:, None, :], (N_WROWS, CH, LANES2))


@functools.partial(jax.jit, static_argnames=("tm_rows",))
def static_mimo_nonlin(u_lin, w1, b1, w2, b2, *, tm_rows=1024):
    """u_lin: (..., 2) float32.  Returns (..., 2) float32."""
    orig_shape = u_lin.shape
    assert orig_shape[-1] == IN_F
    flat = u_lin.reshape(-1).astype(jnp.float32)           # (2N,)  free reshape
    n_elems = flat.shape[0]
    n_samples = n_elems // IN_F

    # Rows of 256 interleaved values (128 samples); keep the row count a
    # multiple of CH so the in-kernel chunk loop has no ragged tail.  When N
    # is already a multiple of 1024 samples the pad / slice below are no-ops.
    r = pl.cdiv(n_elems, CH * LANES2) * CH
    padded = r * LANES2
    if padded != n_elems:
        flat = jnp.pad(flat, (0, padded - n_elems))        # contiguous copy (only if unaligned)
    x = flat.reshape(r, LANES2)                            # natural interleaved layout

    tm = min(tm_rows, r)                                   # both are multiples of CH
    grid = (pl.cdiv(r, tm),)
    wpack = _pack_weights(w1, b1, w2, b2)

    cost = pl.CostEstimate(
        flops=182 * n_samples,
        transcendentals=0,
        bytes_accessed=16 * n_samples + N_WROWS * CH * LANES2 * 4,
    )

    out = pl.pallas_call(
        _mlp_kernel,
        out_shape=jax.ShapeDtypeStruct((r, LANES2), jnp.float32),
        grid=grid,
        in_specs=[
            pl.BlockSpec((tm, LANES2), lambda i: (i, 0)),              # data row tile
            pl.BlockSpec((N_WROWS, CH, LANES2), lambda i: (0, 0, 0)),  # weight slabs
        ],
        out_specs=pl.BlockSpec((tm, LANES2), lambda i: (i, 0)),
        compiler_params=pltpu.CompilerParams(
            dimension_semantics=("parallel",),
        ),
        cost_estimate=cost,
    )(x, wpack)

    y = out.reshape(-1)
    if padded != n_elems:
        y = y[:n_elems]                                    # contiguous slice (only if unaligned)
    return y.reshape(orig_shape[:-1] + (OUT_F,))


def init_params(key):
    """Deterministic init matching nn.Linear shapes.

    PyTorch stores weight as (out_features, in_features); we store the
    transpose (in_features, out_features).
    """
    k1, k2, k3, k4 = jax.random.split(key, 4)
    bound1 = 1.0 / jnp.sqrt(float(IN_F))
    bound2 = 1.0 / jnp.sqrt(float(HID_F))
    w1 = jax.random.uniform(k1, (IN_F, HID_F), jnp.float32, -bound1, bound1)
    b1 = jax.random.uniform(k2, (HID_F,), jnp.float32, -bound1, bound1)
    w2 = jax.random.uniform(k3, (HID_F, OUT_F), jnp.float32, -bound2, bound2)
    b2 = jax.random.uniform(k4, (OUT_F,), jnp.float32, -bound2, bound2)
    return w1, b1, w2, b2


def _reference(u_lin, w1, b1, w2, b2):
    h = jnp.maximum(u_lin @ w1 + b1, 0.0)
    return h @ w2 + b2


if __name__ == "__main__":
    key = jax.random.PRNGKey(0)
    k_in, k_par, k_in2 = jax.random.split(key, 3)

    w1, b1, w2, b2 = init_params(k_par)

    # Small shape consistent with the module: (batch=2, seq=8, features=2).
    u_small = jax.random.normal(k_in, (2, 8, IN_F), dtype=jnp.float32)
    y_small = jax.block_until_ready(static_mimo_nonlin(u_small, w1, b1, w2, b2))
    y_small_ref = _reference(u_small, w1, b1, w2, b2)
    assert y_small.shape == (2, 8, OUT_F)
    assert jnp.allclose(y_small, y_small_ref, atol=1e-5, rtol=1e-5)

    # Larger, unaligned shape with a small tile: exercises a multi-step grid,
    # Pallas boundary padding and the in-kernel chunk loop.
    u_big = jax.random.normal(k_in2, (2, 9000, IN_F), dtype=jnp.float32)
    y_big = jax.block_until_ready(
        static_mimo_nonlin(u_big, w1, b1, w2, b2, tm_rows=64))
    y_big_ref = _reference(u_big, w1, b1, w2, b2)
    assert y_big.shape == (2, 9000, OUT_F)
    assert jnp.allclose(y_big, y_big_ref, atol=1e-5, rtol=1e-5)

    print("KERNEL_OK")
</pallas_src>

<mosaic_0001>
module attributes {stable_mosaic.version = 11 : i64} {
  func.func @_mlp_kernel(%arg0: i32, %arg1: memref<8x256xf32, #tpu.memory_space<vmem>>, %arg2: memref<51x8x256xf32, #tpu.memory_space<vmem>>, %arg3: memref<8x256xf32, #tpu.memory_space<vmem>>) attributes {dimension_semantics = [#tpu.dimension_semantics<parallel>], iteration_bounds = array<i64: 1>, scalar_prefetch = 0 : i64, scratch_operands = 0 : i64, tpu.core_type = #tpu.core_type<tc>, window_params = [{transform_indices = @transform_0, window_bounds = array<i64: 8, 256>}, {pipeline_mode = #tpu.pipeline_mode<synchronous>, transform_indices = @transform_1, window_bounds = array<i64: 51, 8, 256>}, {transform_indices = @transform_2, window_bounds = array<i64: 8, 256>}]} {
    %0 = tpu.iota {dimensions = array<i32: 1>} : vector<8x256xi32>
    %c1_i32 = arith.constant 1 : i32
    %1 = vector.broadcast %c1_i32 : i32 to vector<8x256xi32>
    %2 = arith.andi %0, %1 : vector<8x256xi32>
    %c0_i32 = arith.constant 0 : i32
    %3 = vector.broadcast %c0_i32 : i32 to vector<8x256xi32>
    %4 = arith.cmpi eq, %2, %3 : vector<8x256xi32>
    %c50 = arith.constant 50 : index
    %c0 = arith.constant 0 : index
    %c0_0 = arith.constant 0 : index
    %5 = vector.load %arg2[%c50, %c0, %c0_0] : memref<51x8x256xf32, #tpu.memory_space<vmem>>, vector<1x8x256xf32>
    %6 = vector.shape_cast %5 : vector<1x8x256xf32> to vector<8x256xf32>
    %c0_i32_1 = arith.constant 0 : i32
    %c8_i32 = arith.constant 8 : i32
    %7 = arith.muli %c0_i32_1, %c8_i32 : i32
    %8 = tpu.assume_multiple %7, 8 : i32
    %9 = arith.index_cast %8 : i32 to index
    %c0_2 = arith.constant 0 : index
    %10 = vector.load %arg1[%9, %c0_2] : memref<8x256xf32, #tpu.memory_space<vmem>>, vector<8x256xf32>
    %c1_i32_3 = arith.constant 1 : i32
    %11 = tpu.dynamic_rotate %10 by %c1_i32_3 dim 1 : vector<8x256xf32>, i32 -> vector<8x256xf32>
    %12 = arith.select %4, %10, %11 : vector<8x256xi1>, vector<8x256xf32>
    %c255_i32 = arith.constant 255 : i32
    %13 = tpu.dynamic_rotate %10 by %c255_i32 dim 1 : vector<8x256xf32>, i32 -> vector<8x256xf32>
    %14 = arith.select %4, %13, %10 : vector<8x256xi1>, vector<8x256xf32>
    %cst = arith.constant 0.000000e+00 : f32
    %15 = vector.broadcast %cst : f32 to vector<8x256xf32>
    %cst_4 = arith.constant 0.000000e+00 : f32
    %16 = vector.broadcast %cst_4 : f32 to vector<8x256xf32>
    %c0_5 = arith.constant 0 : index
    %c0_6 = arith.constant 0 : index
    %c0_7 = arith.constant 0 : index
    %17 = vector.load %arg2[%c0_5, %c0_6, %c0_7] : memref<51x8x256xf32, #tpu.memory_space<vmem>>, vector<1x8x256xf32>
    %18 = vector.shape_cast %17 : vector<1x8x256xf32> to vector<8x256xf32>
    %19 = arith.mulf %18, %12 : vector<8x256xf32>
    %c1 = arith.constant 1 : index
    %c0_8 = arith.constant 0 : index
    %c0_9 = arith.constant 0 : index
    %20 = vector.load %arg2[%c1, %c0_8, %c0_9] : memref<51x8x256xf32, #tpu.memory_space<vmem>>, vector<1x8x256xf32>
    %21 = vector.shape_cast %20 : vector<1x8x256xf32> to vector<8x256xf32>
    %22 = arith.mulf %21, %14 : vector<8x256xf32>
    %23 = arith.addf %19, %22 : vector<8x256xf32>
    %c2 = arith.constant 2 : index
    %c0_10 = arith.constant 0 : index
    %c0_11 = arith.constant 0 : index
    %24 = vector.load %arg2[%c2, %c0_10, %c0_11] : memref<51x8x256xf32, #tpu.memory_space<vmem>>, vector<1x8x256xf32>
    %25 = vector.shape_cast %24 : vector<1x8x256xf32> to vector<8x256xf32>
    %26 = arith.addf %23, %25 : vector<8x256xf32>
    %cst_12 = arith.constant 0.000000e+00 : f32
    %27 = vector.broadcast %cst_12 : f32 to vector<8x256xf32>
    %28 = arith.maximumf %26, %27 : vector<8x256xf32>
    %c3 = arith.constant 3 : index
    %c0_13 = arith.constant 0 : index
    %c0_14 = arith.constant 0 : index
    %29 = vector.load %arg2[%c3, %c0_13, %c0_14] : memref<51x8x256xf32, #tpu.memory_space<vmem>>, vector<1x8x256xf32>
    %30 = vector.shape_cast %29 : vector<1x8x256xf32> to vector<8x256xf32>
    %31 = arith.mulf %30, %28 : vector<8x256xf32>
    %32 = arith.addf %15, %31 : vector<8x256xf32>
    %c4 = arith.constant 4 : index
    %c0_15 = arith.constant 0 : index
    %c0_16 = arith.constant 0 : index
    %33 = vector.load %arg2[%c4, %c0_15, %c0_16] : memref<51x8x256xf32, #tpu.memory_space<vmem>>, vector<1x8x256xf32>
    %34 = vector.shape_cast %33 : vector<1x8x256xf32> to vector<8x256xf32>
    %35 = arith.mulf %34, %28 : vector<8x256xf32>
    %36 = arith.addf %16, %35 : vector<8x256xf32>
    %c5 = arith.constant 5 : index
    %c0_17 = arith.constant 0 : index
    %c0_18 = arith.constant 0 : index
    %37 = vector.load %arg2[%c5, %c0_17, %c0_18] : memref<51x8x256xf32, #tpu.memory_space<vmem>>, vector<1x8x256xf32>
    %38 = vector.shape_cast %37 : vector<1x8x256xf32> to vector<8x256xf32>
    %39 = arith.mulf %38, %12 : vector<8x256xf32>
    %c6 = arith.constant 6 : index
    %c0_19 = arith.constant 0 : index
    %c0_20 = arith.constant 0 : index
    %40 = vector.load %arg2[%c6, %c0_19, %c0_20] : memref<51x8x256xf32, #tpu.memory_space<vmem>>, vector<1x8x256xf32>
    %41 = vector.shape_cast %40 : vector<1x8x256xf32> to vector<8x256xf32>
    %42 = arith.mulf %41, %14 : vector<8x256xf32>
    %43 = arith.addf %39, %42 : vector<8x256xf32>
    %c7 = arith.constant 7 : index
    %c0_21 = arith.constant 0 : index
    %c0_22 = arith.constant 0 : index
    %44 = vector.load %arg2[%c7, %c0_21, %c0_22] : memref<51x8x256xf32, #tpu.memory_space<vmem>>, vector<1x8x256xf32>
    %45 = vector.shape_cast %44 : vector<1x8x256xf32> to vector<8x256xf32>
    %46 = arith.addf %43, %45 : vector<8x256xf32>
    %cst_23 = arith.constant 0.000000e+00 : f32
    %47 = vector.broadcast %cst_23 : f32 to vector<8x256xf32>
    %48 = arith.maximumf %46, %47 : vector<8x256xf32>
    %c8 = arith.constant 8 : index
    %c0_24 = arith.constant 0 : index
    %c0_25 = arith.constant 0 : index
    %49 = vector.load %arg2[%c8, %c0_24, %c0_25] : memref<51x8x256xf32, #tpu.memory_space<vmem>>, vector<1x8x256xf32>
    %50 = vector.shape_cast %49 : vector<1x8x256xf32> to vector<8x256xf32>
    %51 = arith.mulf %50, %48 : vector<8x256xf32>
    %52 = arith.addf %32, %51 : vector<8x256xf32>
    %c9 = arith.constant 9 : index
    %c0_26 = arith.constant 0 : index
    %c0_27 = arith.constant 0 : index
    %53 = vector.load %arg2[%c9, %c0_26, %c0_27] : memref<51x8x256xf32, #tpu.memory_space<vmem>>, vector<1x8x256xf32>
    %54 = vector.shape_cast %53 : vector<1x8x256xf32> to vector<8x256xf32>
    %55 = arith.mulf %54, %48 : vector<8x256xf32>
    %56 = arith.addf %36, %55 : vector<8x256xf32>
    %c10 = arith.constant 10 : index
    %c0_28 = arith.constant 0 : index
    %c0_29 = arith.constant 0 : index
    %57 = vector.load %arg2[%c10, %c0_28, %c0_29] : memref<51x8x256xf32, #tpu.memory_space<vmem>>, vector<1x8x256xf32>
    %58 = vector.shape_cast %57 : vector<1x8x256xf32> to vector<8x256xf32>
    %59 = arith.mulf %58, %12 : vector<8x256xf32>
    %c11 = arith.constant 11 : index
    %c0_30 = arith.constant 0 : index
    %c0_31 = arith.constant 0 : index
    %60 = vector.load %arg2[%c11, %c0_30, %c0_31] : memref<51x8x256xf32, #tpu.memory_space<vmem>>, vector<1x8x256xf32>
    %61 = vector.shape_cast %60 : vector<1x8x256xf32> to vector<8x256xf32>
    %62 = arith.mulf %61, %14 : vector<8x256xf32>
    %63 = arith.addf %59, %62 : vector<8x256xf32>
    %c12 = arith.constant 12 : index
    %c0_32 = arith.constant 0 : index
    %c0_33 = arith.constant 0 : index
    %64 = vector.load %arg2[%c12, %c0_32, %c0_33] : memref<51x8x256xf32, #tpu.memory_space<vmem>>, vector<1x8x256xf32>
    %65 = vector.shape_cast %64 : vector<1x8x256xf32> to vector<8x256xf32>
    %66 = arith.addf %63, %65 : vector<8x256xf32>
    %cst_34 = arith.constant 0.000000e+00 : f32
    %67 = vector.broadcast %cst_34 : f32 to vector<8x256xf32>
    %68 = arith.maximumf %66, %67 : vector<8x256xf32>
    %c13 = arith.constant 13 : index
    %c0_35 = arith.constant 0 : index
    %c0_36 = arith.constant 0 : index
    %69 = vector.load %arg2[%c13, %c0_35, %c0_36] : memref<51x8x256xf32, #tpu.memory_space<vmem>>, vector<1x8x256xf32>
    %70 = vector.shape_cast %69 : vector<1x8x256xf32> to vector<8x256xf32>
    %71 = arith.mulf %70, %68 : vector<8x256xf32>
    %72 = arith.addf %52, %71 : vector<8x256xf32>
    %c14 = arith.constant 14 : index
    %c0_37 = arith.constant 0 : index
    %c0_38 = arith.constant 0 : index
    %73 = vector.load %arg2[%c14, %c0_37, %c0_38] : memref<51x8x256xf32, #tpu.memory_space<vmem>>, vector<1x8x256xf32>
    %74 = vector.shape_cast %73 : vector<1x8x256xf32> to vector<8x256xf32>
    %75 = arith.mulf %74, %68 : vector<8x256xf32>
    %76 = arith.addf %56, %75 : vector<8x256xf32>
    %c15 = arith.constant 15 : index
    %c0_39 = arith.constant 0 : index
    %c0_40 = arith.constant 0 : index
    %77 = vector.load %arg2[%c15, %c0_39, %c0_40] : memref<51x8x256xf32, #tpu.memory_space<vmem>>, vector<1x8x256xf32>
    %78 = vector.shape_cast %77 : vector<1x8x256xf32> to vector<8x256xf32>
    %79 = arith.mulf %78, %12 : vector<8x256xf32>
    %c16 = arith.constant 16 : index
    %c0_41 = arith.constant 0 : index
    %c0_42 = arith.constant 0 : index
    %80 = vector.load %arg2[%c16, %c0_41, %c0_42] : memref<51x8x256xf32, #tpu.memory_space<vmem>>, vector<1x8x256xf32>
    %81 = vector.shape_cast %80 : vector<1x8x256xf32> to vector<8x256xf32>
    %82 = arith.mulf %81, %14 : vector<8x256xf32>
    %83 = arith.addf %79, %82 : vector<8x256xf32>
    %c17 = arith.constant 17 : index
    %c0_43 = arith.constant 0 : index
    %c0_44 = arith.constant 0 : index
    %84 = vector.load %arg2[%c17, %c0_43, %c0_44] : memref<51x8x256xf32, #tpu.memory_space<vmem>>, vector<1x8x256xf32>
    %85 = vector.shape_cast %84 : vector<1x8x256xf32> to vector<8x256xf32>
    %86 = arith.addf %83, %85 : vector<8x256xf32>
    %cst_45 = arith.constant 0.000000e+00 : f32
    %87 = vector.broadcast %cst_45 : f32 to vector<8x256xf32>
    %88 = arith.maximumf %86, %87 : vector<8x256xf32>
    %c18 = arith.constant 18 : index
    %c0_46 = arith.constant 0 : index
    %c0_47 = arith.constant 0 : index
    %89 = vector.load %arg2[%c18, %c0_46, %c0_47] : memref<51x8x256xf32, #tpu.memory_space<vmem>>, vector<1x8x256xf32>
    %90 = vector.shape_cast %89 : vector<1x8x256xf32> to vector<8x256xf32>
    %91 = arith.mulf %90, %88 : vector<8x256xf32>
    %92 = arith.addf %72, %91 : vector<8x256xf32>
    %c19 = arith.constant 19 : index
    %c0_48 = arith.constant 0 : index
    %c0_49 = arith.constant 0 : index
    %93 = vector.load %arg2[%c19, %c0_48, %c0_49] : memref<51x8x256xf32, #tpu.memory_space<vmem>>, vector<1x8x256xf32>
    %94 = vector.shape_cast %93 : vector<1x8x256xf32> to vector<8x256xf32>
    %95 = arith.mulf %94, %88 : vector<8x256xf32>
    %96 = arith.addf %76, %95 : vector<8x256xf32>
    %c20 = arith.constant 20 : index
    %c0_50 = arith.constant 0 : index
    %c0_51 = arith.constant 0 : index
    %97 = vector.load %arg2[%c20, %c0_50, %c0_51] : memref<51x8x256xf32, #tpu.memory_space<vmem>>, vector<1x8x256xf32>
    %98 = vector.shape_cast %97 : vector<1x8x256xf32> to vector<8x256xf32>
    %99 = arith.mulf %98, %12 : vector<8x256xf32>
    %c21 = arith.constant 21 : index
    %c0_52 = arith.constant 0 : index
    %c0_53 = arith.constant 0 : index
    %100 = vector.load %arg2[%c21, %c0_52, %c0_53] : memref<51x8x256xf32, #tpu.memory_space<vmem>>, vector<1x8x256xf32>
    %101 = vector.shape_cast %100 : vector<1x8x256xf32> to vector<8x256xf32>
    %102 = arith.mulf %101, %14 : vector<8x256xf32>
    %103 = arith.addf %99, %102 : vector<8x256xf32>
    %c22 = arith.constant 22 : index
    %c0_54 = arith.constant 0 : index
    %c0_55 = arith.constant 0 : index
    %104 = vector.load %arg2[%c22, %c0_54, %c0_55] : memref<51x8x256xf32, #tpu.memory_space<vmem>>, vector<1x8x256xf32>
    %105 = vector.shape_cast %104 : vector<1x8x256xf32> to vector<8x256xf32>
    %106 = arith.addf %103, %105 : vector<8x256xf32>
    %cst_56 = arith.constant 0.000000e+00 : f32
    %107 = vector.broadcast %cst_56 : f32 to vector<8x256xf32>
    %108 = arith.maximumf %106, %107 : vector<8x256xf32>
    %c23 = arith.constant 23 : index
    %c0_57 = arith.constant 0 : index
    %c0_58 = arith.constant 0 : index
    %109 = vector.load %arg2[%c23, %c0_57, %c0_58] : memref<51x8x256xf32, #tpu.memory_space<vmem>>, vector<1x8x256xf32>
    %110 = vector.shape_cast %109 : vector<1x8x256xf32> to vector<8x256xf32>
    %111 = arith.mulf %110, %108 : vector<8x256xf32>
    %112 = arith.addf %92, %111 : vector<8x256xf32>
    %c24 = arith.constant 24 : index
    %c0_59 = arith.constant 0 : index
    %c0_60 = arith.constant 0 : index
    %113 = vector.load %arg2[%c24, %c0_59, %c0_60] : memref<51x8x256xf32, #tpu.memory_space<vmem>>, vector<1x8x256xf32>
    %114 = vector.shape_cast %113 : vector<1x8x256xf32> to vector<8x256xf32>
    %115 = arith.mulf %114, %108 : vector<8x256xf32>
    %116 = arith.addf %96, %115 : vector<8x256xf32>
    %c25 = arith.constant 25 : index
    %c0_61 = arith.constant 0 : index
    %c0_62 = arith.constant 0 : index
    %117 = vector.load %arg2[%c25, %c0_61, %c0_62] : memref<51x8x256xf32, #tpu.memory_space<vmem>>, vector<1x8x256xf32>
    %118 = vector.shape_cast %117 : vector<1x8x256xf32> to vector<8x256xf32>
    %119 = arith.mulf %118, %12 : vector<8x256xf32>
    %c26 = arith.constant 26 : index
    %c0_63 = arith.constant 0 : index
    %c0_64 = arith.constant 0 : index
    %120 = vector.load %arg2[%c26, %c0_63, %c0_64] : memref<51x8x256xf32, #tpu.memory_space<vmem>>, vector<1x8x256xf32>
    %121 = vector.shape_cast %120 : vector<1x8x256xf32> to vector<8x256xf32>
    %122 = arith.mulf %121, %14 : vector<8x256xf32>
    %123 = arith.addf %119, %122 : vector<8x256xf32>
    %c27 = arith.constant 27 : index
    %c0_65 = arith.constant 0 : index
    %c0_66 = arith.constant 0 : index
    %124 = vector.load %arg2[%c27, %c0_65, %c0_66] : memref<51x8x256xf32, #tpu.memory_space<vmem>>, vector<1x8x256xf32>
    %125 = vector.shape_cast %124 : vector<1x8x256xf32> to vector<8x256xf32>
    %126 = arith.addf %123, %125 : vector<8x256xf32>
    %cst_67 = arith.constant 0.000000e+00 : f32
    %127 = vector.broadcast %cst_67 : f32 to vector<8x256xf32>
    %128 = arith.maximumf %126, %127 : vector<8x256xf32>
    %c28 = arith.constant 28 : index
    %c0_68 = arith.constant 0 : index
    %c0_69 = arith.constant 0 : index
    %129 = vector.load %arg2[%c28, %c0_68, %c0_69] : memref<51x8x256xf32, #tpu.memory_space<vmem>>, vector<1x8x256xf32>
    %130 = vector.shape_cast %129 : vector<1x8x256xf32> to vector<8x256xf32>
    %131 = arith.mulf %130, %128 : vector<8x256xf32>
    %132 = arith.addf %112, %131 : vector<8x256xf32>
    %c29 = arith.constant 29 : index
    %c0_70 = arith.constant 0 : index
    %c0_71 = arith.constant 0 : index
    %133 = vector.load %arg2[%c29, %c0_70, %c0_71] : memref<51x8x256xf32, #tpu.memory_space<vmem>>, vector<1x8x256xf32>
    %134 = vector.shape_cast %133 : vector<1x8x256xf32> to vector<8x256xf32>
    %135 = arith.mulf %134, %128 : vector<8x256xf32>
    %136 = arith.addf %116, %135 : vector<8x256xf32>
    %c30 = arith.constant 30 : index
    %c0_72 = arith.constant 0 : index
    %c0_73 = arith.constant 0 : index
    %137 = vector.load %arg2[%c30, %c0_72, %c0_73] : memref<51x8x256xf32, #tpu.memory_space<vmem>>, vector<1x8x256xf32>
    %138 = vector.shape_cast %137 : vector<1x8x256xf32> to vector<8x256xf32>
    %139 = arith.mulf %138, %12 : vector<8x256xf32>
    %c31 = arith.constant 31 : index
    %c0_74 = arith.constant 0 : index
    %c0_75 = arith.constant 0 : index
    %140 = vector.load %arg2[%c31, %c0_74, %c0_75] : memref<51x8x256xf32, #tpu.memory_space<vmem>>, vector<1x8x256xf32>
    %141 = vector.shape_cast %140 : vector<1x8x256xf32> to vector<8x256xf32>
    %142 = arith.mulf %141, %14 : vector<8x256xf32>
    %143 = arith.addf %139, %142 : vector<8x256xf32>
    %c32 = arith.constant 32 : index
    %c0_76 = arith.constant 0 : index
    %c0_77 = arith.constant 0 : index
    %144 = vector.load %arg2[%c32, %c0_76, %c0_77] : memref<51x8x256xf32, #tpu.memory_space<vmem>>, vector<1x8x256xf32>
    %145 = vector.shape_cast %144 : vector<1x8x256xf32> to vector<8x256xf32>
    %146 = arith.addf %143, %145 : vector<8x256xf32>
    %cst_78 = arith.constant 0.000000e+00 : f32
    %147 = vector.broadcast %cst_78 : f32 to vector<8x256xf32>
    %148 = arith.maximumf %146, %147 : vector<8x256xf32>
    %c33 = arith.constant 33 : index
    %c0_79 = arith.constant 0 : index
    %c0_80 = arith.constant 0 : index
    %149 = vector.load %arg2[%c33, %c0_79, %c0_80] : memref<51x8x256xf32, #tpu.memory_space<vmem>>, vector<1x8x256xf32>
    %150 = vector.shape_cast %149 : vector<1x8x256xf32> to vector<8x256xf32>
    %151 = arith.mulf %150, %148 : vector<8x256xf32>
    %152 = arith.addf %132, %151 : vector<8x256xf32>
    %c34 = arith.constant 34 : index
    %c0_81 = arith.constant 0 : index
    %c0_82 = arith.constant 0 : index
    %153 = vector.load %arg2[%c34, %c0_81, %c0_82] : memref<51x8x256xf32, #tpu.memory_space<vmem>>, vector<1x8x256xf32>
    %154 = vector.shape_cast %153 : vector<1x8x256xf32> to vector<8x256xf32>
    %155 = arith.mulf %154, %148 : vector<8x256xf32>
    %156 = arith.addf %136, %155 : vector<8x256xf32>
    %c35 = arith.constant 35 : index
    %c0_83 = arith.constant 0 : index
    %c0_84 = arith.constant 0 : index
    %157 = vector.load %arg2[%c35, %c0_83, %c0_84] : memref<51x8x256xf32, #tpu.memory_space<vmem>>, vector<1x8x256xf32>
    %158 = vector.shape_cast %157 : vector<1x8x256xf32> to vector<8x256xf32>
    %159 = arith.mulf %158, %12 : vector<8x256xf32>
    %c36 = arith.constant 36 : index
    %c0_85 = arith.constant 0 : index
    %c0_86 = arith.constant 0 : index
    %160 = vector.load %arg2[%c36, %c0_85, %c0_86] : memref<51x8x256xf32, #tpu.memory_space<vmem>>, vector<1x8x256xf32>
    %161 = vector.shape_cast %160 : vector<1x8x256xf32> to vector<8x256xf32>
    %162 = arith.mulf %161, %14 : vector<8x256xf32>
    %163 = arith.addf %159, %162 : vector<8x256xf32>
    %c37 = arith.constant 37 : index
    %c0_87 = arith.constant 0 : index
    %c0_88 = arith.constant 0 : index
    %164 = vector.load %arg2[%c37, %c0_87, %c0_88] : memref<51x8x256xf32, #tpu.memory_space<vmem>>, vector<1x8x256xf32>
    %165 = vector.shape_cast %164 : vector<1x8x256xf32> to vector<8x256xf32>
    %166 = arith.addf %163, %165 : vector<8x256xf32>
    %cst_89 = arith.constant 0.000000e+00 : f32
    %167 = vector.broadcast %cst_89 : f32 to vector<8x256xf32>
    %168 = arith.maximumf %166, %167 : vector<8x256xf32>
    %c38 = arith.constant 38 : index
    %c0_90 = arith.constant 0 : index
    %c0_91 = arith.constant 0 : index
    %169 = vector.load %arg2[%c38, %c0_90, %c0_91] : memref<51x8x256xf32, #tpu.memory_space<vmem>>, vector<1x8x256xf32>
    %170 = vector.shape_cast %169 : vector<1x8x256xf32> to vector<8x256xf32>
    %171 = arith.mulf %170, %168 : vector<8x256xf32>
    %172 = arith.addf %152, %171 : vector<8x256xf32>
    %c39 = arith.constant 39 : index
    %c0_92 = arith.constant 0 : index
    %c0_93 = arith.constant 0 : index
    %173 = vector.load %arg2[%c39, %c0_92, %c0_93] : memref<51x8x256xf32, #tpu.memory_space<vmem>>, vector<1x8x256xf32>
    %174 = vector.shape_cast %173 : vector<1x8x256xf32> to vector<8x256xf32>
    %175 = arith.mulf %174, %168 : vector<8x256xf32>
    %176 = arith.addf %156, %175 : vector<8x256xf32>
    %c40 = arith.constant 40 : index
    %c0_94 = arith.constant 0 : index
    %c0_95 = arith.constant 0 : index
    %177 = vector.load %arg2[%c40, %c0_94, %c0_95] : memref<51x8x256xf32, #tpu.memory_space<vmem>>, vector<1x8x256xf32>
    %178 = vector.shape_cast %177 : vector<1x8x256xf32> to vector<8x256xf32>
    %179 = arith.mulf %178, %12 : vector<8x256xf32>
    %c41 = arith.constant 41 : index
    %c0_96 = arith.constant 0 : index
    %c0_97 = arith.constant 0 : index
    %180 = vector.load %arg2[%c41, %c0_96, %c0_97] : memref<51x8x256xf32, #tpu.memory_space<vmem>>, vector<1x8x256xf32>
    %181 = vector.shape_cast %180 : vector<1x8x256xf32> to vector<8x256xf32>
    %182 = arith.mulf %181, %14 : vector<8x256xf32>
    %183 = arith.addf %179, %182 : vector<8x256xf32>
    %c42 = arith.constant 42 : index
    %c0_98 = arith.constant 0 : index
    %c0_99 = arith.constant 0 : index
    %184 = vector.load %arg2[%c42, %c0_98, %c0_99] : memref<51x8x256xf32, #tpu.memory_space<vmem>>, vector<1x8x256xf32>
    %185 = vector.shape_cast %184 : vector<1x8x256xf32> to vector<8x256xf32>
    %186 = arith.addf %183, %185 : vector<8x256xf32>
    %cst_100 = arith.constant 0.000000e+00 : f32
    %187 = vector.broadcast %cst_100 : f32 to vector<8x256xf32>
    %188 = arith.maximumf %186, %187 : vector<8x256xf32>
    %c43 = arith.constant 43 : index
    %c0_101 = arith.constant 0 : index
    %c0_102 = arith.constant 0 : index
    %189 = vector.load %arg2[%c43, %c0_101, %c0_102] : memref<51x8x256xf32, #tpu.memory_space<vmem>>, vector<1x8x256xf32>
    %190 = vector.shape_cast %189 : vector<1x8x256xf32> to vector<8x256xf32>
    %191 = arith.mulf %190, %188 : vector<8x256xf32>
    %192 = arith.addf %172, %191 : vector<8x256xf32>
    %c44 = arith.constant 44 : index
    %c0_103 = arith.constant 0 : index
    %c0_104 = arith.constant 0 : index
    %193 = vector.load %arg2[%c44, %c0_103, %c0_104] : memref<51x8x256xf32, #tpu.memory_space<vmem>>, vector<1x8x256xf32>
    %194 = vector.shape_cast %193 : vector<1x8x256xf32> to vector<8x256xf32>
    %195 = arith.mulf %194, %188 : vector<8x256xf32>
    %196 = arith.addf %176, %195 : vector<8x256xf32>
    %c45 = arith.constant 45 : index
    %c0_105 = arith.constant 0 : index
    %c0_106 = arith.constant 0 : index
    %197 = vector.load %arg2[%c45, %c0_105, %c0_106] : memref<51x8x256xf32, #tpu.memory_space<vmem>>, vector<1x8x256xf32>
    %198 = vector.shape_cast %197 : vector<1x8x256xf32> to vector<8x256xf32>
    %199 = arith.mulf %198, %12 : vector<8x256xf32>
    %c46 = arith.constant 46 : index
    %c0_107 = arith.constant 0 : index
    %c0_108 = arith.constant 0 : index
    %200 = vector.load %arg2[%c46, %c0_107, %c0_108] : memref<51x8x256xf32, #tpu.memory_space<vmem>>, vector<1x8x256xf32>
    %201 = vector.shape_cast %200 : vector<1x8x256xf32> to vector<8x256xf32>
    %202 = arith.mulf %201, %14 : vector<8x256xf32>
    %203 = arith.addf %199, %202 : vector<8x256xf32>
    %c47 = arith.constant 47 : index
    %c0_109 = arith.constant 0 : index
    %c0_110 = arith.constant 0 : index
    %204 = vector.load %arg2[%c47, %c0_109, %c0_110] : memref<51x8x256xf32, #tpu.memory_space<vmem>>, vector<1x8x256xf32>
    %205 = vector.shape_cast %204 : vector<1x8x256xf32> to vector<8x256xf32>
    %206 = arith.addf %203, %205 : vector<8x256xf32>
    %cst_111 = arith.constant 0.000000e+00 : f32
    %207 = vector.broadcast %cst_111 : f32 to vector<8x256xf32>
    %208 = arith.maximumf %206, %207 : vector<8x256xf32>
    %c48 = arith.constant 48 : index
    %c0_112 = arith.constant 0 : index
    %c0_113 = arith.constant 0 : index
    %209 = vector.load %arg2[%c48, %c0_112, %c0_113] : memref<51x8x256xf32, #tpu.memory_space<vmem>>, vector<1x8x256xf32>
    %210 = vector.shape_cast %209 : vector<1x8x256xf32> to vector<8x256xf32>
    %211 = arith.mulf %210, %208 : vector<8x256xf32>
    %212 = arith.addf %192, %211 : vector<8x256xf32>
    %c49 = arith.constant 49 : index
    %c0_114 = arith.constant 0 : index
    %c0_115 = arith.constant 0 : index
    %213 = vector.load %arg2[%c49, %c0_114, %c0_115] : memref<51x8x256xf32, #tpu.memory_space<vmem>>, vector<1x8x256xf32>
    %214 = vector.shape_cast %213 : vector<1x8x256xf32> to vector<8x256xf32>
    %215 = arith.mulf %214, %208 : vector<8x256xf32>
    %216 = arith.addf %196, %215 : vector<8x256xf32>
    %c255_i32_116 = arith.constant 255 : i32
    %217 = tpu.dynamic_rotate %216 by %c255_i32_116 dim 1 : vector<8x256xf32>, i32 -> vector<8x256xf32>
    %c1_i32_117 = arith.constant 1 : i32
    %218 = tpu.dynamic_rotate %216 by %c1_i32_117 dim 1 : vector<8x256xf32>, i32 -> vector<8x256xf32>
    %219 = arith.select %4, %217, %218 : vector<8x256xi1>, vector<8x256xf32>
    %220 = arith.addf %212, %219 : vector<8x256xf32>
    %221 = arith.addf %220, %6 : vector<8x256xf32>
    %222 = arith.index_cast %8 : i32 to index
    %c0_118 = arith.constant 0 : index
    %223 = vector.load %arg3[%222, %c0_118] : memref<8x256xf32, #tpu.memory_space<vmem>>, vector<8x256xf32>
    tpu.vector_store %arg3[%222, %c0_118], %221 {strides = array<i32>} : memref<8x256xf32, #tpu.memory_space<vmem>>, vector<8x256xf32>,
    %c1_i32_119 = arith.constant 1 : i32
    return
  }
  func.func @transform_0(%arg0: i32) -> (i32, i32) {
    %c0_i32 = arith.constant 0 : i32
    %c0_i32_0 = arith.constant 0 : i32
    return %arg0, %c0_i32 : i32, i32
  }
  func.func @transform_1(%arg0: i32) -> (i32, i32, i32) {
    %c0_i32 = arith.constant 0 : i32
    %c0_i32_0 = arith.constant 0 : i32
    %c0_i32_1 = arith.constant 0 : i32
    %c0_i32_2 = arith.constant 0 : i32
    return %c0_i32, %c0_i32_0, %c0_i32_1 : i32, i32, i32
  }
  func.func @transform_2(%arg0: i32) -> (i32, i32) {
    %c0_i32 = arith.constant 0 : i32
    %c0_i32_0 = arith.constant 0 : i32
    return %arg0, %c0_i32 : i32, i32
  }
}

</mosaic_0001>

<bundles_post_ra>
// kernel: static_mimo_nonlin.1
= control target key start
LH: loop header
LB: loop body
LE: loop exit
PB: predicated region body
PF: predicated region fallthrough
CT: control target
= control target key end

     0   :  { %s501_s11 = smov 127   ;;  %s502_s12 = smov 1   ;;  %v11_v2 = vlaneseq  ;;  %s1063_s0 = inlined_call_operand.vmem [shape: f32[8,256], index: 0, kind: input, shape index: {}]   ;;  %s1064_s1 = inlined_call_operand.vmem [shape: f32[51,8,256], index: 1, kind: input, shape index: {}]   ;;  %s1065_s2 = inlined_call_operand.vmem [shape: f32[8,256], index: 2, kind: output, shape index: {}]  }
   0x1   :  { %v24_v0 = vld [vmem:[%s1063_s0] sm:$0xff]  ;;  %v25_v1 = vld [vmem:[%s1063_s0 + $0x8] sm:$0xff]  ;;  %v401_v12 = vld [vmem:[%s1064_s1 + $0x10] sm:$0xff] }
   0x2   :  { %35 = vrot.lane.b32.xlu1 %v24_v0, %s501_s11  ;;  %26 = vrot.lane.b32.xlu0 %v24_v0, %s502_s12  ;;  %v528_v3 = vand.u32 127, %v11_v2  ;;  %v44_v11 = vld [vmem:[%s1064_s1] sm:$0xff]  ;;  %v409_v15 = vld [vmem:[%s1064_s1 + $0x50] sm:$0xff] }
   0x3   :  { %v411_v16 = vld [vmem:[%s1064_s1 + $0x60] sm:$0xff]  ;;  %v421_v22 = vld [vmem:[%s1064_s1 + $0xb0] sm:$0xff] }
   0x4   :  { %v13_v4 = vadd.s32 128, %v528_v3  ;;  %v14_v5 = vand.u32 1, %v528_v3  ;;  %vm39_vm0 = vcmp.lt.s32.totalorder %v528_v3, 127  ;;  %vm30_vm1 = vcmp.lt.s32.totalorder %v528_v3, 1  ;;  %v419_v17 = vld [vmem:[%s1064_s1 + $0xa0] sm:$0xff]  ;;  %v429_v23 = vld [vmem:[%s1064_s1 + $0xf0] sm:$0xff] }
   0x5   :  { %v431_v24 = vld [vmem:[%s1064_s1 + $0x100] sm:$0xff]  ;;  %v441_v30 = vld [vmem:[%s1064_s1 + $0x150] sm:$0xff] }
   0x6   :  { %37 = vrot.lane.b32.xlu1 %v25_v1, %s501_s11  ;;  %28 = vrot.lane.b32.xlu0 %v25_v1, %s502_s12  ;;  %v15_v6 = vand.u32 1, %v13_v4  ;;  %vm534_vm2 = vcmp.eq.s32.totalorder %v14_v5, 0  ;;  %v439_v29 = vld [vmem:[%s1064_s1 + $0x140] sm:$0xff]  ;;  %v449_v35 = vld [vmem:[%s1064_s1 + $0x190] sm:$0xff] }
   0x7   :  { %v451_v36 = vld [vmem:[%s1064_s1 + $0x1a0] sm:$0xff]  ;;  %v413_v38 = vld [vmem:[%s1064_s1 + $0x70] sm:$0xff] }
   0x8   :  { %vm538_vm3 = vcmp.eq.s32.totalorder %v15_v6, 0  ;;  %v403_v37 = vld [vmem:[%s1064_s1 + $0x20] sm:$0xff]  ;;  %v433_v47 = vld [vmem:[%s1064_s1 + $0x110] sm:$0xff] }
   0x9   :  { %v459_v43 = vld [vmem:[%s1064_s1 + $0x1e0] sm:$0xff]  ;;  %v461_v50 = vld [vmem:[%s1064_s1 + $0x1f0] sm:$0xff] }
   0xa   :  { %v423_v46 = vld [vmem:[%s1064_s1 + $0xc0] sm:$0xff]  ;;  %v469_v56 = vld [vmem:[%s1064_s1 + $0x230] sm:$0xff] }
   0xb   :  { %v443_v53 = vld [vmem:[%s1064_s1 + $0x160] sm:$0xff]  ;;  %v453_v60 = vld [vmem:[%s1064_s1 + $0x1b0] sm:$0xff] }
   0xc   :  { %v407_v62 = vld [vmem:[%s1064_s1 + $0x40] sm:$0xff]  ;;  %v417_v63 = vld [vmem:[%s1064_s1 + $0x90] sm:$0xff] }
   0xd   :  { %v471_v5 = vld [vmem:[%s1064_s1 + $0x240] sm:$0xff] }
  0x74   :  { %v36_v7 = vpop.permute.xlu1 %35  ;;  %v27_v8 = vpop.permute.xlu0 %26 }
  0x78   :  { %v38_v13 = vpop.permute.xlu1 %37  ;;  %v29_v14 = vpop.permute.xlu0 %28 }
  0x79   :  { %v40_v18 = vsel %vm39_vm0, %v36_v7, %v38_v13  ;;  %v41_v19 = vsel %vm39_vm0, %v38_v13, %v36_v7  ;;  %v31_v20 = vsel %vm30_vm1, %v27_v8, %v29_v14  ;;  %v32_v21 = vsel %vm30_vm1, %v29_v14, %v27_v8  ;;  %v427_v8 = vld [vmem:[%s1064_s1 + $0xe0] sm:$0xff] }
  0x7a   :  { %v576_v25 = vsel %vm534_vm2, %v40_v18, %v24_v0  ;;  %v580_v26 = vsel %vm538_vm3, %v41_v19, %v25_v1  ;;  %v584_v27 = vsel %vm534_vm2, %v24_v0, %v32_v21  ;;  %v588_v28 = vsel %vm538_vm3, %v25_v1, %v31_v20  ;;  %v463_v13 = vld [vmem:[%s1064_s1 + $0x200] sm:$0xff] }
  0x7b   :  { %v46_v31 = vmul.f32 %v44_v11, %v584_v27  ;;  %v51_v32 = vmul.f32 %v401_v12, %v576_v25  ;;  %v79_v33 = vmul.f32 %v409_v15, %v584_v27  ;;  %v84_v34 = vmul.f32 %v411_v16, %v576_v25  ;;  %v437_v11 = vld [vmem:[%s1064_s1 + $0x130] sm:$0xff]  ;;  %v479_v20 = vld [vmem:[%s1064_s1 + $0x280] sm:$0xff] }
  0x7c   :  { %v112_v39 = vmul.f32 %v419_v17, %v584_v27  ;;  %v117_v40 = vmul.f32 %v421_v22, %v576_v25  ;;  %v145_v41 = vmul.f32 %v429_v23, %v584_v27  ;;  %v150_v42 = vmul.f32 %v431_v24, %v576_v25  ;;  %v447_v17 = vld [vmem:[%s1064_s1 + $0x180] sm:$0xff]  ;;  %v457_v24 = vld [vmem:[%s1064_s1 + $0x1d0] sm:$0xff] }
  0x7d   :  { %v53_v44 = vadd.f32 %v51_v32, %v46_v31  ;;  %v86_v45 = vadd.f32 %v84_v34, %v79_v33  ;;  %v178_v48 = vmul.f32 %v439_v29, %v584_v27  ;;  %v183_v49 = vmul.f32 %v441_v30, %v576_v25  ;;  %v481_v30 = vld [vmem:[%s1064_s1 + $0x290] sm:$0xff] }
  0x7e   :  { %v119_v51 = vadd.f32 %v117_v40, %v112_v39  ;;  %v152_v52 = vadd.f32 %v150_v42, %v145_v41  ;;  %v211_v54 = vmul.f32 %v449_v35, %v584_v27  ;;  %v216_v55 = vmul.f32 %v451_v36, %v576_v25  ;;  %v489_v31 = vld [vmem:[%s1064_s1 + $0x2d0] sm:$0xff]  ;;  %v467_v41 = vld [vmem:[%s1064_s1 + $0x220] sm:$0xff] }
  0x7f   :  { %v638_v57 = vadd.f32 %v403_v37, %v53_v44  ;;  %v640_v58 = vadd.f32 %v413_v38, %v86_v45  ;;  %v185_v59 = vadd.f32 %v183_v49, %v178_v48  ;;  %v244_v61 = vmul.f32 %v459_v43, %v584_v27  ;;  %v473_v36 = vld [vmem:[%s1064_s1 + $0x250] sm:$0xff]  ;;  %v491_v37 = vld [vmem:[%s1064_s1 + $0x2e0] sm:$0xff]  ;;  %v45_v38 = vld [vmem:[%s1064_s1 + $0x8] sm:$0xff] }
  0x80   :  { %v652_v0 = vadd.f32 %v423_v46, %v119_v51  ;;  %v654_v1 = vadd.f32 %v433_v47, %v152_v52  ;;  %v218_v2 = vadd.f32 %v216_v55, %v211_v54  ;;  %v249_v4 = vmul.f32 %v461_v50, %v576_v25  ;;  %v402_v44 = vld [vmem:[%s1064_s1 + $0x18] sm:$0xff]  ;;  %v412_v50 = vld [vmem:[%s1064_s1 + $0x68] sm:$0xff] }
  0x81   :  { %v60_v6 = vmax.f32 %v638_v57, 0.0  ;;  %v93_v7 = vmax.f32 %v640_v58, 0.0  ;;  %v668_v12 = vadd.f32 %v443_v53, %v185_v59  ;;  %v277_v14 = vmul.f32 %v469_v56, %v584_v27  ;;  %v410_v45 = vld [vmem:[%s1064_s1 + $0x58] sm:$0xff]  ;;  %v483_v53 = vld [vmem:[%s1064_s1 + $0x2a0] sm:$0xff]  ;;  %v420_v56 = vld [vmem:[%s1064_s1 + $0xa8] sm:$0xff] }
  0x82   :  { %v126_v15 = vmax.f32 %v652_v0, 0.0  ;;  %v159_v16 = vmax.f32 %v654_v1, 0.0  ;;  %v679_v18 = vadd.f32 %v453_v60, %v218_v2  ;;  %v251_v19 = vadd.f32 %v249_v4, %v244_v61  ;;  %v477_v60 = vld [vmem:[%s1064_s1 + $0x270] sm:$0xff] }
  0x83   :  { %v72_v21 = vmul.f32 %v407_v62, %v60_v6  ;;  %v105_v22 = vmul.f32 %v417_v63, %v93_v7  ;;  %v192_v23 = vmax.f32 %v668_v12, 0.0  ;;  %v282_v29 = vmul.f32 %v471_v5, %v576_v25 }
  0x84   :  { %v138_v32 = vmul.f32 %v427_v8, %v126_v15  ;;  %v171_v33 = vmul.f32 %v437_v11, %v159_v16  ;;  %v225_v34 = vmax.f32 %v679_v18, 0.0  ;;  %v704_v35 = vadd.f32 %v463_v13, %v251_v19  ;;  %v404_v8 = vld [vmem:[%s1064_s1 + $0x28] sm:$0xff]  ;;  %v430_v13 = vld [vmem:[%s1064_s1 + $0xf8] sm:$0xff] }
  0x85   :  { %v107_v39 = vadd.f32 %v105_v22, %v72_v21  ;;  %v204_v40 = vmul.f32 %v447_v17, %v192_v23  ;;  %v284_v42 = vadd.f32 %v282_v29, %v277_v14  ;;  %v310_v43 = vmul.f32 %v479_v20, %v584_v27  ;;  %v414_v19 = vld [vmem:[%s1064_s1 + $0x78] sm:$0xff]  ;;  %v432_v22 = vld [vmem:[%s1064_s1 + $0x108] sm:$0xff] }
  0x86   :  { %v237_v46 = vmul.f32 %v457_v24, %v225_v34  ;;  %v258_v47 = vmax.f32 %v704_v35, 0.0  ;;  %v315_v48 = vmul.f32 %v481_v30, %v576_v25  ;;  %v343_v49 = vmul.f32 %v489_v31, %v584_v27  ;;  %v422_v27 = vld [vmem:[%s1064_s1 + $0xb8] sm:$0xff]  ;;  %v487_v30 = vld [vmem:[%s1064_s1 + $0x2c0] sm:$0xff]  ;;  %v436_v18 = vld [vmem:[%s1064_s1 + $0x128] sm:$0xff] }
  0x87   :  { %v140_v51 = vadd.f32 %v138_v32, %v107_v39  ;;  %v735_v52 = vadd.f32 %v473_v36, %v284_v42  ;;  %v348_v54 = vmul.f32 %v491_v37, %v576_v25  ;;  %v47_v55 = vmul.f32 %v45_v38, %v588_v28  ;;  %v493_v25 = vld [vmem:[%s1064_s1 + $0x2f0] sm:$0xff]  ;;  %v440_v36 = vld [vmem:[%s1064_s1 + $0x148] sm:$0xff] }
  0x88   :  { %v270_v59 = vmul.f32 %v467_v41, %v258_v47  ;;  %v317_v61 = vadd.f32 %v315_v48, %v310_v43  ;;  %v52_v62 = vmul.f32 %v402_v44, %v580_v26  ;;  %v80_v63 = vmul.f32 %v410_v45, %v588_v28  ;;  %v497_v38 = vld [vmem:[%s1064_s1 + $0x310] sm:$0xff]  ;;  %v408_v44 = vld [vmem:[%s1064_s1 + $0x48] sm:$0xff] }
  0x89   :  { %v173_v2 = vadd.f32 %v171_v33, %v140_v51  ;;  %v291_v4 = vmax.f32 %v735_v52, 0.0  ;;  %v350_v5 = vadd.f32 %v348_v54, %v343_v49  ;;  %v85_v11 = vmul.f32 %v412_v50, %v580_v26  ;;  %v424_v33 = vld [vmem:[%s1064_s1 + $0xc8] sm:$0xff]  ;;  %v442_v49 = vld [vmem:[%s1064_s1 + $0x158] sm:$0xff] }
  0x8a   :  { %v766_v14 = vadd.f32 %v483_v53, %v317_v61  ;;  %v54_v17 = vadd.f32 %v52_v62, %v47_v55  ;;  %v113_v20 = vmul.f32 %v420_v56, %v588_v28  ;;  %v118_v21 = vmul.f32 %v422_v27, %v580_v26  ;;  %v450_v50 = vld [vmem:[%s1064_s1 + $0x198] sm:$0xff]  ;;  %v452_v27 = vld [vmem:[%s1064_s1 + $0x1a8] sm:$0xff] }
  0x8b   :  { %v206_v24 = vadd.f32 %v204_v40, %v173_v2  ;;  %v303_v29 = vmul.f32 %v477_v60, %v291_v4  ;;  %v781_v31 = vadd.f32 %v493_v25, %v350_v5  ;;  %v87_v32 = vadd.f32 %v85_v11, %v80_v63  ;;  %v418_v53 = vld [vmem:[%s1064_s1 + $0x98] sm:$0xff]  ;;  %v428_v62 = vld [vmem:[%s1064_s1 + $0xe8] sm:$0xff] }
  0x8c   :  { %v324_v37 = vmax.f32 %v766_v14, 0.0  ;;  %v793_v39 = vadd.f32 %v404_v8, %v54_v17  ;;  %v120_v40 = vadd.f32 %v118_v21, %v113_v20  ;;  %v146_v41 = vmul.f32 %v430_v13, %v588_v28  ;;  %v434_v55 = vld [vmem:[%s1064_s1 + $0x118] sm:$0xff]  ;;  %v460_v2 = vld [vmem:[%s1064_s1 + $0x1e8] sm:$0xff] }
  0x8d   :  { %v239_v42 = vadd.f32 %v237_v46, %v206_v24  ;;  %v357_v43 = vmax.f32 %v781_v31, 0.0  ;;  %v800_v45 = vadd.f32 %v414_v19, %v87_v32  ;;  %v151_v48 = vmul.f32 %v432_v22, %v580_v26  ;;  %v462_v5 = vld [vmem:[%s1064_s1 + $0x1f8] sm:$0xff]  ;;  %v444_v21 = vld [vmem:[%s1064_s1 + $0x168] sm:$0xff] }
  0x8e   :  { %v336_v46 = vmul.f32 %v487_v30, %v324_v37  ;;  %v61_v51 = vmax.f32 %v793_v39, 0.0  ;;  %v815_v54 = vadd.f32 %v424_v33, %v120_v40  ;;  %v179_v56 = vmul.f32 %v440_v36, %v588_v28  ;;  %v470_v24 = vld [vmem:[%s1064_s1 + $0x238] sm:$0xff]  ;;  %v472_v30 = vld [vmem:[%s1064_s1 + $0x248] sm:$0xff] }
  0x8f   :  { %v272_v60 = vadd.f32 %v270_v59, %v239_v42  ;;  %v369_v61 = vmul.f32 %v497_v38, %v357_v43  ;;  %v94_v25 = vmax.f32 %v800_v45, 0.0  ;;  %v153_v63 = vadd.f32 %v151_v48, %v146_v41  ;;  %v438_v32 = vld [vmem:[%s1064_s1 + $0x138] sm:$0xff] }
  0x90   :  { %v73_v59 = vmul.f32 %v408_v44, %v61_v51  ;;  %v127_v8 = vmax.f32 %v815_v54, 0.0  ;;  %v184_v11 = vmul.f32 %v442_v49, %v580_v26  ;;  %v212_v13 = vmul.f32 %v450_v50, %v588_v28  ;;  %v454_v36 = vld [vmem:[%s1064_s1 + $0x1b8] sm:$0xff]  ;;  %v464_v49 = vld [vmem:[%s1064_s1 + $0x208] sm:$0xff] }
  0x91   :  { %v305_v17 = vadd.f32 %v303_v29, %v272_v60  ;;  %v106_v19 = vmul.f32 %v418_v53, %v94_v25  ;;  %v843_v20 = vadd.f32 %v434_v55, %v153_v63  ;;  %v217_v22 = vmul.f32 %v452_v27, %v580_v26  ;;  %v480_v50 = vld [vmem:[%s1064_s1 + $0x288] sm:$0xff]  ;;  %v490_v60 = vld [vmem:[%s1064_s1 + $0x2d8] sm:$0xff] }
  0x92   :  { %v139_v29 = vmul.f32 %v428_v62, %v127_v8  ;;  %v186_v33 = vadd.f32 %v184_v11, %v179_v56  ;;  %v245_v38 = vmul.f32 %v460_v2, %v588_v28  ;;  %v250_v40 = vmul.f32 %v462_v5, %v580_v26  ;;  %v448_v5 = vld [vmem:[%s1064_s1 + $0x188] sm:$0xff]  ;;  %v474_v11 = vld [vmem:[%s1064_s1 + $0x258] sm:$0xff] }
  0x93   :  { %v338_v41 = vadd.f32 %v336_v46, %v305_v17  ;;  %v108_v42 = vadd.f32 %v106_v19, %v73_v59  ;;  %v160_v44 = vmax.f32 %v843_v20, 0.0  ;;  %v219_v48 = vadd.f32 %v217_v22, %v212_v13  ;;  %v482_v46 = vld [vmem:[%s1064_s1 + $0x298] sm:$0xff]  ;;  %v492_v13 = vld [vmem:[%s1064_s1 + $0x2e8] sm:$0xff]  ;;  %v405_v22 = vld [vmem:[%s1064_s1 + $0x30] sm:$0xff] }
  0x94   :  { %v872_v53 = vadd.f32 %v444_v21, %v186_v33  ;;  %v252_v55 = vadd.f32 %v250_v40, %v245_v38  ;;  %v278_v56 = vmul.f32 %v470_v24, %v588_v28  ;;  %v283_v27 = vmul.f32 %v472_v30, %v580_v26  ;;  %v415_v24 = vld [vmem:[%s1064_s1 + $0x80] sm:$0xff]  ;;  %v446_v39 = vld [vmem:[%s1064_s1 + $0x178] sm:$0xff] }
  0x95   :  { %v371_v62 = vadd.f32 %v369_v61, %v338_v41  ;;  %v141_v63 = vadd.f32 %v139_v29, %v108_v42  ;;  %v172_v2 = vmul.f32 %v438_v32, %v160_v44  ;;  %v887_v59 = vadd.f32 %v454_v36, %v219_v48  ;;  %v458_v32 = vld [vmem:[%s1064_s1 + $0x1d8] sm:$0xff]  ;;  %v484_v42 = vld [vmem:[%s1064_s1 + $0x2a8] sm:$0xff] }
  0x96   :  { %v193_v61 = vmax.f32 %v872_v53, 0.0  ;;  %v896_v17 = vadd.f32 %v464_v49, %v252_v55  ;;  %v285_v19 = vadd.f32 %v283_v27, %v278_v56  ;;  %v311_v21 = vmul.f32 %v480_v50, %v588_v28  ;;  %v425_v49 = vld [vmem:[%s1064_s1 + $0xd0] sm:$0xff]  ;;  %v494_v55 = vld [vmem:[%s1064_s1 + $0x2f8] sm:$0xff]  ;;  %v476_v53 = vld [vmem:[%s1064_s1 + $0x268] sm:$0xff] }
  0x97   :  { %373 = vrot.lane.b32.xlu0 %v371_v62, %s501_s11  ;;  %v174_v30 = vadd.f32 %v172_v2, %v141_v63  ;;  %v226_v29 = vmax.f32 %v887_v59, 0.0  ;;  %v316_v33 = vmul.f32 %v482_v46, %v580_v26  ;;  %v344_v36 = vmul.f32 %v490_v60, %v588_v28  ;;  %v468_v28 = vld [vmem:[%s1064_s1 + $0x228] sm:$0xff]  ;;  %v435_v2 = vld [vmem:[%s1064_s1 + $0x120] sm:$0xff]  ;;  %v466_v14 = vld [vmem:[%s1064_s1 + $0x218] sm:$0xff] }
  0x98   :  { %v205_v38 = vmul.f32 %v448_v5, %v193_v61  ;;  %v259_v40 = vmax.f32 %v896_v17, 0.0  ;;  %v915_v41 = vadd.f32 %v474_v11, %v285_v19  ;;  %v349_v48 = vmul.f32 %v492_v13, %v580_v26  ;;  %v478_v5 = vld [vmem:[%s1064_s1 + $0x278] sm:$0xff]  ;;  %v445_v19 = vld [vmem:[%s1064_s1 + $0x170] sm:$0xff]  ;;  %v496_v59 = vld [vmem:[%s1064_s1 + $0x308] sm:$0xff] }
  0x99   :  { %v318_v50 = vadd.f32 %v316_v33, %v311_v21  ;;  %v65_v56 = vmul.f32 %v405_v22, %v60_v6  ;;  %v98_v27 = vmul.f32 %v415_v24, %v93_v7  ;;  %v238_v46 = vmul.f32 %v458_v32, %v226_v29  ;;  %v488_v22 = vld [vmem:[%s1064_s1 + $0x2c8] sm:$0xff]  ;;  %v455_v33 = vld [vmem:[%s1064_s1 + $0x1c0] sm:$0xff] }
  0x9a   :  { %v207_v26 = vadd.f32 %v205_v38, %v174_v30  ;;  %v292_v60 = vmax.f32 %v915_v41, 0.0  ;;  %v351_v63 = vadd.f32 %v349_v48, %v344_v36  ;;  %v131_v6 = vmul.f32 %v425_v49, %v126_v15  ;;  %v416_v32 = vld [vmem:[%s1064_s1 + $0x88] sm:$0xff]  ;;  %v498_v36 = vld [vmem:[%s1064_s1 + $0x318] sm:$0xff]  ;;  %v465_v49 = vld [vmem:[%s1064_s1 + $0x210] sm:$0xff] }
  0x9b   :  { %v943_v57 = vadd.f32 %v484_v42, %v318_v50  ;;  %379 = vrot.lane.b32.xlu0 %v371_v62, %s502_s12  ;;  %v100_v58 = vadd.f32 %v98_v27, %v65_v56  ;;  %v271_v11 = vmul.f32 %v468_v28, %v259_v40  ;;  %v164_v0 = vmul.f32 %v435_v2, %v159_v16  ;;  %v406_v48 = vld [vmem:[%s1064_s1 + $0x38] sm:$0xff]  ;;  %v475_v27 = vld [vmem:[%s1064_s1 + $0x260] sm:$0xff] }
  0x9c   :  { %v240_v7 = vadd.f32 %v238_v46, %v207_v26  ;;  %v356_v13 = vadd.f32 %v494_v55, %v351_v63  ;;  %v304_v24 = vmul.f32 %v478_v5, %v292_v60  ;;  %v197_v1 = vmul.f32 %v445_v19, %v192_v23  ;;  %v426_v23 = vld [vmem:[%s1064_s1 + $0xd8] sm:$0xff] }
  0x9d   :  { %v325_v21 = vmax.f32 %v943_v57, 0.0  ;;  %v133_v62 = vadd.f32 %v131_v6, %v100_v58  ;;  %v99_v28 = vmul.f32 %v416_v32, %v94_v25  ;;  %v230_v55 = vmul.f32 %v455_v33, %v225_v34  ;;  %v485_v34 = vld [vmem:[%s1064_s1 + $0x2b0] sm:$0xff]  ;;  %v400_v33 = vld [vmem:[%s1064_s1 + $0x328] sm:$0xff] }
  0x9e   :  { %v273_v15 = vadd.f32 %v271_v11, %v240_v7  ;;  %v358_v30 = vmax.f32 %v356_v13, 0.0  ;;  %v263_v46 = vmul.f32 %v465_v49, %v258_v47  ;;  %v66_v45 = vmul.f32 %v406_v48, %v61_v51  ;;  %v495_v51 = vld [vmem:[%s1064_s1 + $0x300] sm:$0xff] }
  0x9f   :  { %v166_v38 = vadd.f32 %v164_v0, %v133_v62  ;;  %v337_v42 = vmul.f32 %v488_v22, %v325_v21  ;;  %v132_v63 = vmul.f32 %v426_v23, %v127_v8  ;;  %v296_v35 = vmul.f32 %v475_v27, %v291_v4  ;;  %v456_v4 = vld [vmem:[%s1064_s1 + $0x1c8] sm:$0xff] }
  0xa0   :  { %v306_v16 = vadd.f32 %v304_v24, %v273_v15  ;;  %v370_v12 = vmul.f32 %v498_v36, %v358_v30  ;;  %v101_v47 = vadd.f32 %v99_v28, %v66_v45  ;;  %v165_v5 = vmul.f32 %v436_v18, %v160_v44 }
  0xa1   :  { %v199_v50 = vadd.f32 %v197_v1, %v166_v38  ;;  %v329_v8 = vmul.f32 %v485_v34, %v324_v37  ;;  %v198_v57 = vmul.f32 %v446_v39, %v193_v61  ;;  %v362_v6 = vmul.f32 %v495_v51, %v357_v43  ;;  %v486_v61 = vld [vmem:[%s1064_s1 + $0x2b8] sm:$0xff] }
  0xa2   :  { %v339_v56 = vadd.f32 %v337_v42, %v306_v16  ;;  %v134_v52 = vadd.f32 %v132_v63, %v101_v47  ;;  %v231_v37 = vmul.f32 %v456_v4, %v226_v29  ;;  %v264_v31 = vmul.f32 %v466_v14, %v259_v40 }
  0xa3   :  { %v232_v26 = vadd.f32 %v230_v55, %v199_v50  ;;  %v297_v11 = vmul.f32 %v476_v53, %v292_v60  ;;  %v330_v29 = vmul.f32 %v486_v61, %v325_v21  ;;  %v363_v22 = vmul.f32 %v496_v59, %v358_v30  ;;  %v399_v30 = vld [vmem:[%s1064_s1 + $0x320] sm:$0xff] }
  0xa4   :  { %v372_v25 = vadd.f32 %v370_v12, %v339_v56  ;;  %v167_v7 = vadd.f32 %v165_v5, %v134_v52 }
  0xa5   :  { %v265_v2 = vadd.f32 %v263_v46, %v232_v26 }
  0xa6   :  { %375 = vrot.lane.b32.xlu1 %v372_v25, %s501_s11  ;;  %v200_v44 = vadd.f32 %v198_v57, %v167_v7 }
  0xa7   :  { %v298_v54 = vadd.f32 %v296_v35, %v265_v2 }
  0xa8   :  { %v233_v43 = vadd.f32 %v231_v37, %v200_v44 }
  0xa9   :  { %v331_v58 = vadd.f32 %v329_v8, %v298_v54 }
  0xaa   :  { %381 = vrot.lane.b32.xlu1 %v372_v25, %s502_s12  ;;  %v266_v13 = vadd.f32 %v264_v31, %v233_v43 }
  0xab   :  { %v364_v20 = vadd.f32 %v362_v6, %v331_v58 }
  0xac   :  { %v299_v19 = vadd.f32 %v297_v11, %v266_v13 }
  0xae   :  { %v332_v62 = vadd.f32 %v330_v29, %v299_v19 }
  0xb0   :  { %v365_v0 = vadd.f32 %v363_v22, %v332_v62 }
 0x109   :  { %v374_v17 = vpop.permute.xlu0 %373 }
 0x10d   :  { %v380_v15 = vpop.permute.xlu0 %379 }
 0x118   :  { %v376_v40 = vpop.permute.xlu1 %375 }
 0x119   :  { %v377_v32 = vsel %vm39_vm0, %v374_v17, %v376_v40  ;;  %v378_v41 = vsel %vm39_vm0, %v376_v40, %v374_v17 }
 0x11c   :  { %v382_v24 = vpop.permute.xlu1 %381 }
 0x11d   :  { %v383_v60 = vsel %vm30_vm1, %v380_v15, %v382_v24  ;;  %v384_v21 = vsel %vm30_vm1, %v382_v24, %v380_v15 }
 0x11e   :  { %v385_v36 = vsel %vm534_vm2, %v377_v32, %v384_v21  ;;  %v386_v38 = vsel %vm538_vm3, %v378_v41, %v383_v60 }
 0x11f   :  { %v387_v1 = vadd.f32 %v385_v36, %v364_v20  ;;  %v388_v16 = vadd.f32 %v386_v38, %v365_v0 }
 0x121   :  { %v389_v42 = vadd.f32 %v399_v30, %v387_v1  ;;  %v390_v48 = vadd.f32 %v400_v33, %v388_v16 }
 0x123   :  { %393 = vst [vmem:[%s1065_s2] sm:$0xff] %v389_v42  ;;  %394 = vst [vmem:[%s1065_s2 + $0x8] sm:$0xff] %v390_v48 }

</bundles_post_ra>
